<compile_context>
chip_gen: v7x
topology: tpu7x:2x2x1
jax: 0.10.0
libtpu: 0.0.40
codegen_flags: <defaults>
</compile_context>

<pallas_src>
import functools
import math

import jax
import jax.numpy as jnp
from jax import lax
from jax.experimental import pallas as pl
from jax.experimental.pallas import tpu as pltpu

MIN_NORM = 1e-15  # same clamp constant as pvae / geoopt

# Contract the minor (D) axis of both operands ("A @ B^T") on the MXU.
_NT_DIMS = (((1,), (1,)), ((), ()))


# ---------------------------------------------------------------------------
# Pallas kernel: signed hyperbolic distance-to-gyroplane, lane-dense over points.
#
# For each point x and plane (bias b, tangent normal w):
#   alpha = 1 - 2c<b,x> + c||x||^2          beta  = 1 - c||b||^2
#   gamma = 1 - 2c<b,x> + c^2||b||^2||x||^2 (mobius_add(-b, x) denominator)
#   q     = alpha^2||b||^2 - 2 alpha beta <b,x> + beta^2||x||^2  (= gamma^2 ||diff||^2)
#   s     = beta<x,w> - alpha<b,w>                                (= gamma <diff, w>)
#   res   = arsinh( 2 sqrt(c) * s * gamma / ((gamma^2 - c q) * ||w||) ) / sqrt(c)
# ---------------------------------------------------------------------------
def _gyroplane_kernel(x_ref, pcat_ref, scal_ref, o_ref, *, c, out_ch):
    x = x_ref[...]                       # (TN, D)   points, natural layout (D minor)
    pcat = pcat_ref[...]                 # (2O, D)   [2c*bias ; weight] stacked
    cb2 = scal_ref[:, 0:1]               # (O, 1)    c ||b||^2
    beta = scal_ref[:, 1:2]              # (O, 1)    1 - c ||b||^2
    ccb2 = scal_ref[:, 2:3]              # (O, 1)    c^2 ||b||^2
    bw = scal_ref[:, 3:4]                # (O, 1)    <b, w>
    cbeta2 = scal_ref[:, 4:5]            # (O, 1)    c * beta^2
    k2s = scal_ref[:, 5:6]               # (O, 1)    2*sqrt(c) / max(||w||, MIN_NORM)

    # Fused (2O, D) x (TN, D)^T matmul on the MXU (NT dims, flash-attention style).
    r = lax.dot_general(pcat, x, _NT_DIMS, preferred_element_type=jnp.float32)
    xb2c = r[:out_ch, :]                 # 2c<x, b>  (O, TN)
    xw = r[out_ch:, :]                   # <x, w>    (O, TN)

    # ||x||^2 as a lane-dense (1, TN) row via a tiny ones-matmul (MXU slot is idle).
    ones = jnp.ones((8, x.shape[1]), jnp.float32)
    x2 = lax.dot_general(ones, x * x, _NT_DIMS,
                         preferred_element_type=jnp.float32)[0:1, :]     # (1, TN)

    t = 1.0 - xb2c
    alpha = t + c * x2
    gamma = jnp.maximum(t + ccb2 * x2, MIN_NORM)
    cq = (alpha * alpha) * cb2 - alpha * (beta * xb2c) + cbeta2 * x2      # = c * q
    s = beta * xw - alpha * bw
    denom = jnp.maximum(gamma * gamma - cq, MIN_NORM)
    z = (k2s * s) * gamma * pl.reciprocal(denom, approx=True)
    # arsinh(z) = log(z + sqrt(1 + z^2)), clamped exactly like pvae's Arsinh.
    inv_sqrt_c = 1.0 / (c ** 0.5)
    o_ref[...] = jnp.log(jnp.maximum(z + jnp.sqrt(1.0 + z * z), MIN_NORM)) * inv_sqrt_c


def _pick_tile(n_pad):
    """n_pad is a multiple of 128.  Take the largest 128-multiple divisor of n_pad
    up to 4096 lanes: per-tile VMEM (~1 MiB double-buffered at 4096 lanes) is far
    below every generation's VMEM, large tiles amortize the ~0.35us per-step
    overhead, and no halving is forced on 1-TC chips (v5e/v6e).  For n_pad > 4096
    the grid naturally has >=2 steps, so v7x's two TensorCores both get work via
    the "parallel" grid axis without shrinking tiles below ~2048 lanes."""
    if n_pad <= 4096:
        return n_pad
    t = 4096
    while n_pad % t:
        t -= 128
    return t


def _gyroplane_pallas(xf, pcat, scal, c, out_ch, tile_n, n_pad):
    d = xf.shape[1]
    kernel = functools.partial(_gyroplane_kernel, c=c, out_ch=out_ch)
    return pl.pallas_call(
        kernel,
        out_shape=jax.ShapeDtypeStruct((out_ch, n_pad), jnp.float32),
        grid_spec=pltpu.PrefetchScalarGridSpec(
            num_scalar_prefetch=0,
            grid=(n_pad // tile_n,),
            in_specs=[
                pl.BlockSpec((tile_n, d), lambda i: (i, 0)),      # streamed points (natural layout)
                pl.BlockSpec(pcat.shape, lambda i: (0, 0)),       # resident fused params
                pl.BlockSpec(scal.shape, lambda i: (0, 0)),       # resident per-plane scalars
            ],
            out_specs=pl.BlockSpec((out_ch, tile_n), lambda i: (0, i)),
        ),
        compiler_params=pltpu.CompilerParams(dimension_semantics=("parallel",)),
    )(xf, pcat, scal)


# ---------------------------------------------------------------------------
# Module glue (plain JAX): replicates the PyTorch forward's reshapes.
# ---------------------------------------------------------------------------
def gyroplane_conv_forward(x, bias, weight, c, kernel_size=1):
    """x: (sampled_dim=32, batch, manifold_dim) -- the module's input convention."""
    sampled_dim, batch, d = x.shape
    assert sampled_dim == 32, "PyTorch forward hard-codes view(batch, 4, 4, 2, D)"
    # TODO(synk): the reference forward only reshapes correctly for kernel_size == 1
    # (its depth patch slice `k-s:k-s+1` has size 1); we implement that working case,
    # where the zero-padding and the sum over the (size-1) patch dim are identities.
    assert kernel_size == 1
    o = bias.shape[0]
    n = sampled_dim * batch

    # Natural-layout flatten (free, contiguous): row m = s*batch + b, D stays minor.
    xf = x.reshape(n, d).astype(jnp.float32)
    n_pad = ((n + 127) // 128) * 128
    if n_pad != n:
        xf = jnp.pad(xf, ((0, n_pad - n), (0, 0)))      # zero points are benign
    tile_n = _pick_tile(n_pad)

    sqrt_c = c ** 0.5
    # Fused parameter block: bias rows pre-scaled by 2c so the matmul yields 2c<x,b>.
    pcat = jnp.concatenate([(2.0 * c) * bias, weight], axis=0).astype(jnp.float32)  # (2O, D)
    # Hoisted per-plane constants (O(out_ch) scalars, computed once outside kernel).
    b2 = jnp.sum(bias * bias, axis=-1)
    beta = 1.0 - c * b2
    w_norm = jnp.maximum(jnp.sqrt(jnp.sum(weight * weight, axis=-1)), MIN_NORM)
    bw = jnp.sum(bias * weight, axis=-1)
    scal = jnp.stack([c * b2, beta, (c * c) * b2, bw, c * beta * beta,
                      (2.0 * sqrt_c) / w_norm], axis=1).astype(jnp.float32)          # (O, 6)

    dist_m = _gyroplane_pallas(xf, pcat, scal, c, o, tile_n, n_pad)   # (O, n_pad), col m = s*batch + b
    dist_m = dist_m[:, :n]
    # (O, 32, batch) -> (batch, O, 32) -> (batch, O, 4, 4, 2)
    return jnp.transpose(dist_m.reshape(o, sampled_dim, batch), (2, 0, 1)).reshape(
        batch, o, 4, 4, 2)


# ---------------------------------------------------------------------------
# Deterministic parameter construction (mirrors RiemannianLayer.__init__ +
# the .bias / .weight properties: expmap0 / transp0 on the Poincare ball).
# ---------------------------------------------------------------------------
def init_params(key, in_features, out_channels, c):
    k1, k2 = jax.random.split(key)
    # kaiming_normal_(a=sqrt(5)): std = sqrt(2/(1+a^2)) / sqrt(fan_in)
    std = math.sqrt(2.0 / (1.0 + 5.0)) / math.sqrt(in_features)
    _weight = std * jax.random.normal(k1, (out_channels, in_features), jnp.float32)
    bound = 4.0 / math.sqrt(in_features)
    _bias = jax.random.uniform(k2, (out_channels, 1), jnp.float32, -bound, bound)
    sqrt_c = c ** 0.5
    # bias = expmap0(_weight * _bias)
    v = _weight * _bias
    vn = jnp.maximum(jnp.linalg.norm(v, axis=-1, keepdims=True), MIN_NORM)
    bias = jnp.tanh(sqrt_c * vn) * v / (sqrt_c * vn)
    # weight = transp0(bias, _weight) = _weight * (1 - c*||bias||^2)
    weight = _weight * jnp.maximum(
        1.0 - c * jnp.sum(bias * bias, axis=-1, keepdims=True), MIN_NORM)
    return bias, weight


# Pure-JAX reference (explicit mobius_add vector path) for a sanity check.
def _reference(x, bias, weight, c):
    _, batch, _ = x.shape
    o = bias.shape[0]
    xp = jnp.transpose(x, (1, 0, 2))[:, :, None, :]     # (batch, 32, 1, D)
    a = bias[None, None, :, :]
    p = weight[None, None, :, :]
    u, v = -a, xp
    uv = jnp.sum(u * v, -1, keepdims=True)
    u2 = jnp.sum(u * u, -1, keepdims=True)
    v2 = jnp.sum(v * v, -1, keepdims=True)
    diff = ((1 + 2 * c * uv + c * v2) * u + (1 - c * u2) * v) / jnp.maximum(
        1 + 2 * c * uv + c * c * u2 * v2, MIN_NORM)
    dn2 = jnp.maximum(jnp.sum(diff * diff, -1), MIN_NORM)
    sc = jnp.sum(diff * p, -1)
    an = jnp.maximum(jnp.linalg.norm(p, axis=-1), MIN_NORM)
    z = 2 * math.sqrt(c) * sc / jnp.maximum((1 - c * dn2) * an, MIN_NORM)
    d = jnp.log(jnp.maximum(z + jnp.sqrt(1 + z * z), MIN_NORM)) / math.sqrt(c)
    return jnp.transpose(d, (0, 2, 1)).reshape(batch, o, 4, 4, 2)


if __name__ == "__main__":
    key = jax.random.PRNGKey(0)
    # batch=5 exercises the N-padding path (160 points -> 256 lanes).
    batch, manifold_dim, out_channels = 5, 16, 16
    kernel_size = 1
    c = 1.0  # Poincare ball curvature

    kp, kx = jax.random.split(key)
    bias, weight = init_params(kp, manifold_dim, out_channels, c)

    # input: [sampled_dim=32, batch, manifold_dim], points strictly inside the ball
    u = jax.random.normal(kx, (32, batch, manifold_dim), jnp.float32)
    x = 0.5 * u / (1.0 + jnp.linalg.norm(u, axis=-1, keepdims=True))

    out = gyroplane_conv_forward(x, bias, weight, c, kernel_size=kernel_size)
    out = jax.block_until_ready(out)
    assert out.shape == (batch, out_channels, 4, 4, 2), out.shape

    ref = _reference(x, bias, weight, c)
    assert jnp.allclose(out, ref, atol=3e-3, rtol=3e-3), float(
        jnp.max(jnp.abs(out - ref)))
    print("KERNEL_OK")
</pallas_src>

<mosaic_0001>
module attributes {stable_mosaic.version = 11 : i64} {
  func.func @_gyroplane_kernel(%arg0: i32, %arg1: memref<256x16xf32, #tpu.memory_space<vmem>>, %arg2: memref<32x16xf32, #tpu.memory_space<vmem>>, %arg3: memref<16x6xf32, #tpu.memory_space<vmem>>, %arg4: memref<16x256xf32, #tpu.memory_space<vmem>>) attributes {dimension_semantics = [#tpu.dimension_semantics<parallel>], iteration_bounds = array<i64: 1>, scalar_prefetch = 0 : i64, scratch_operands = 0 : i64, tpu.core_type = #tpu.core_type<tc>, window_params = [{transform_indices = @transform_0, window_bounds = array<i64: 256, 16>}, {pipeline_mode = #tpu.pipeline_mode<synchronous>, transform_indices = @transform_1, window_bounds = array<i64: 32, 16>}, {pipeline_mode = #tpu.pipeline_mode<synchronous>, transform_indices = @transform_2, window_bounds = array<i64: 16, 6>}, {transform_indices = @transform_3, window_bounds = array<i64: 16, 256>}]} {
    %c0 = arith.constant 0 : index
    %c0_0 = arith.constant 0 : index
    %0 = vector.load %arg1[%c0, %c0_0] : memref<256x16xf32, #tpu.memory_space<vmem>>, vector<256x16xf32>
    %c0_1 = arith.constant 0 : index
    %c0_2 = arith.constant 0 : index
    %1 = vector.load %arg2[%c0_1, %c0_2] : memref<32x16xf32, #tpu.memory_space<vmem>>, vector<32x16xf32>
    %c0_3 = arith.constant 0 : index
    %c0_4 = arith.constant 0 : index
    %2 = vector.load %arg3[%c0_3, %c0_4] : memref<16x6xf32, #tpu.memory_space<vmem>>, vector<16x1xf32>
    %c0_5 = arith.constant 0 : index
    %c1 = arith.constant 1 : index
    %3 = vector.load %arg3[%c0_5, %c1] : memref<16x6xf32, #tpu.memory_space<vmem>>, vector<16x1xf32>
    %c0_6 = arith.constant 0 : index
    %c2 = arith.constant 2 : index
    %4 = vector.load %arg3[%c0_6, %c2] : memref<16x6xf32, #tpu.memory_space<vmem>>, vector<16x1xf32>
    %c0_7 = arith.constant 0 : index
    %c3 = arith.constant 3 : index
    %5 = vector.load %arg3[%c0_7, %c3] : memref<16x6xf32, #tpu.memory_space<vmem>>, vector<16x1xf32>
    %c0_8 = arith.constant 0 : index
    %c4 = arith.constant 4 : index
    %6 = vector.load %arg3[%c0_8, %c4] : memref<16x6xf32, #tpu.memory_space<vmem>>, vector<16x1xf32>
    %c0_9 = arith.constant 0 : index
    %c5 = arith.constant 5 : index
    %7 = vector.load %arg3[%c0_9, %c5] : memref<16x6xf32, #tpu.memory_space<vmem>>, vector<16x1xf32>
    %cst = arith.constant dense<0.000000e+00> : vector<32x256xf32>
    %8 = tpu.matmul %1, %0, %cst {dimension_numbers = #tpu.dot_dimension_numbers<[1], [1], [0], [0], [0, 0, 1, 0], [], []>} : vector<32x16xf32>, vector<256x16xf32>, vector<32x256xf32> -> vector<32x256xf32>
    %9 = vector.extract_strided_slice %8 {offsets = [0, 0], sizes = [16, 256], strides = [1, 1]} : vector<32x256xf32> to vector<16x256xf32>
    %10 = vector.extract_strided_slice %8 {offsets = [16, 0], sizes = [16, 256], strides = [1, 1]} : vector<32x256xf32> to vector<16x256xf32>
    %cst_10 = arith.constant 1.000000e+00 : f32
    %11 = vector.broadcast %cst_10 : f32 to vector<8x16xf32>
    %12 = arith.mulf %0, %0 : vector<256x16xf32>
    %cst_11 = arith.constant dense<0.000000e+00> : vector<8x256xf32>
    %13 = tpu.matmul %11, %12, %cst_11 {dimension_numbers = #tpu.dot_dimension_numbers<[1], [1], [0], [0], [0, 0, 1, 0], [], []>} : vector<8x16xf32>, vector<256x16xf32>, vector<8x256xf32> -> vector<8x256xf32>
    %14 = vector.extract_strided_slice %13 {offsets = [0, 0], sizes = [1, 256], strides = [1, 1]} : vector<8x256xf32> to vector<1x256xf32>
    %cst_12 = arith.constant 1.000000e+00 : f32
    %15 = vector.broadcast %cst_12 : f32 to vector<16x256xf32>
    %16 = arith.subf %15, %9 : vector<16x256xf32>
    %cst_13 = arith.constant 1.000000e+00 : f32
    %17 = vector.broadcast %cst_13 : f32 to vector<1x256xf32>
    %18 = arith.mulf %17, %14 : vector<1x256xf32>
    %19 = vector.broadcast %18 : vector<1x256xf32> to vector<16x256xf32>
    %20 = arith.addf %16, %19 : vector<16x256xf32>
    %21 = vector.broadcast %4 : vector<16x1xf32> to vector<16x256xf32>
    %22 = vector.broadcast %14 : vector<1x256xf32> to vector<16x256xf32>
    %23 = arith.mulf %21, %22 : vector<16x256xf32>
    %24 = arith.addf %16, %23 : vector<16x256xf32>
    %cst_14 = arith.constant 1.000000e-15 : f32
    %25 = vector.broadcast %cst_14 : f32 to vector<16x256xf32>
    %26 = arith.maximumf %24, %25 : vector<16x256xf32>
    %27 = arith.mulf %20, %20 : vector<16x256xf32>
    %28 = vector.broadcast %2 : vector<16x1xf32> to vector<16x256xf32>
    %29 = arith.mulf %27, %28 : vector<16x256xf32>
    %30 = vector.broadcast %3 : vector<16x1xf32> to vector<16x256xf32>
    %31 = arith.mulf %30, %9 : vector<16x256xf32>
    %32 = arith.mulf %20, %31 : vector<16x256xf32>
    %33 = arith.subf %29, %32 : vector<16x256xf32>
    %34 = vector.broadcast %6 : vector<16x1xf32> to vector<16x256xf32>
    %35 = vector.broadcast %14 : vector<1x256xf32> to vector<16x256xf32>
    %36 = arith.mulf %34, %35 : vector<16x256xf32>
    %37 = arith.addf %33, %36 : vector<16x256xf32>
    %38 = vector.broadcast %3 : vector<16x1xf32> to vector<16x256xf32>
    %39 = arith.mulf %38, %10 : vector<16x256xf32>
    %40 = vector.broadcast %5 : vector<16x1xf32> to vector<16x256xf32>
    %41 = arith.mulf %20, %40 : vector<16x256xf32>
    %42 = arith.subf %39, %41 : vector<16x256xf32>
    %43 = arith.mulf %26, %26 : vector<16x256xf32>
    %44 = arith.subf %43, %37 : vector<16x256xf32>
    %cst_15 = arith.constant 1.000000e-15 : f32
    %45 = vector.broadcast %cst_15 : f32 to vector<16x256xf32>
    %46 = arith.maximumf %44, %45 : vector<16x256xf32>
    %47 = vector.broadcast %7 : vector<16x1xf32> to vector<16x256xf32>
    %48 = arith.mulf %47, %42 : vector<16x256xf32>
    %49 = arith.mulf %48, %26 : vector<16x256xf32>
    %50 = tpu.reciprocal %46 {approx = true} : vector<16x256xf32> -> vector<16x256xf32>
    %51 = arith.mulf %49, %50 : vector<16x256xf32>
    %52 = arith.mulf %51, %51 : vector<16x256xf32>
    %cst_16 = arith.constant 1.000000e+00 : f32
    %53 = vector.broadcast %cst_16 : f32 to vector<16x256xf32>
    %54 = arith.addf %53, %52 : vector<16x256xf32>
    %55 = math.sqrt %54 : vector<16x256xf32>
    %56 = arith.addf %51, %55 : vector<16x256xf32>
    %cst_17 = arith.constant 1.000000e-15 : f32
    %57 = vector.broadcast %cst_17 : f32 to vector<16x256xf32>
    %58 = arith.maximumf %56, %57 : vector<16x256xf32>
    %59 = math.log %58 : vector<16x256xf32>
    %cst_18 = arith.constant 1.000000e+00 : f32
    %60 = vector.broadcast %cst_18 : f32 to vector<16x256xf32>
    %61 = arith.mulf %59, %60 : vector<16x256xf32>
    %c0_19 = arith.constant 0 : index
    %c0_20 = arith.constant 0 : index
    %62 = vector.load %arg4[%c0_19, %c0_20] : memref<16x256xf32, #tpu.memory_space<vmem>>, vector<16x256xf32>
    tpu.vector_store %arg4[%c0_19, %c0_20], %61 {strides = array<i32>} : memref<16x256xf32, #tpu.memory_space<vmem>>, vector<16x256xf32>,
    return
  }
  func.func @transform_0(%arg0: i32) -> (i32, i32) {
    %c0_i32 = arith.constant 0 : i32
    %c0_i32_0 = arith.constant 0 : i32
    return %arg0, %c0_i32 : i32, i32
  }
  func.func @transform_1(%arg0: i32) -> (i32, i32) {
    %c0_i32 = arith.constant 0 : i32
    %c0_i32_0 = arith.constant 0 : i32
    %c0_i32_1 = arith.constant 0 : i32
    return %c0_i32, %c0_i32_0 : i32, i32
  }
  func.func @transform_2(%arg0: i32) -> (i32, i32) {
    %c0_i32 = arith.constant 0 : i32
    %c0_i32_0 = arith.constant 0 : i32
    %c0_i32_1 = arith.constant 0 : i32
    return %c0_i32, %c0_i32_0 : i32, i32
  }
  func.func @transform_3(%arg0: i32) -> (i32, i32) {
    %c0_i32 = arith.constant 0 : i32
    %c0_i32_0 = arith.constant 0 : i32
    return %c0_i32, %arg0 : i32, i32
  }
}

</mosaic_0001>

<bundles_post_ra>
// kernel: tpu_custom_call.1
= control target key start
LH: loop header
LB: loop body
LE: loop exit
PB: predicated region body
PF: predicated region fallthrough
CT: control target
= control target key end

     0   :  { %vm53_vm0 = vcmask 130048   ;;  %v977_v10 = vmov 1.0   ;;  %v978_v15 = vmov 1   ;;  %v979_v30 = vmov 2   ;;  %s1263_s0 = inlined_call_operand.vmem [shape: f32[256,16], index: 0, kind: input, shape index: {}]   ;;  %s1264_s1 = inlined_call_operand.vmem [shape: f32[32,16], index: 1, kind: input, shape index: {}]   ;;  %s1265_s2 = inlined_call_operand.vmem [shape: f32[16,6], index: 2, kind: input, shape index: {}]   ;;  %s1266_s3 = inlined_call_operand.hbm [shape: f32[16,256], index: 3, kind: output, shape index: {}]  }
   0x1   :  { %v31_v0 = vld [vmem:[%s1263_s0 + $0x80] sm:$0xff]  ;;  %v32_v1 = vld [vmem:[%s1263_s0 + $0x88] sm:$0xff]  ;;  %vm1018_vm1 = vmpackc.low %vm53_vm0, %vm53_vm0  ;;  %812 = vmatprep.mubr.msk.f32.mxu1 %vm53_vm0, %v977_v10  ;;  %921 = vset.pattern.permute.xlu1 %v978_v15 }
   0x2   :  { %v15_v2 = vld [vmem:[%s1263_s0] sm:$0xff]  ;;  %v814_v3 = vpack.c.bf16 %v32_v1, %v31_v0  ;;  %v16_v5 = vld [vmem:[%s1263_s0 + $0x8] sm:$0xff]  ;;  %v267_v6 = vmul.f32 %v31_v0, %v31_v0  ;;  %v268_v7 = vmul.f32 %v32_v1, %v32_v1  ;;  %v33_v9 = vld [vmem:[%s1263_s0 + $0x90] sm:$0xff]  ;;  %920 = vset.pattern.permute.xlu0 %v979_v30 }
   0x3   :  { %v251_v8 = vmul.f32 %v15_v2, %v15_v2  ;;  %v817_v11 = vpack.c.bf16 %v16_v5, %v15_v2  ;;  %v252_v12 = vmul.f32 %v16_v5, %v16_v5  ;;  %v34_v13 = vld [vmem:[%s1263_s0 + $0x98] sm:$0xff]  ;;  %v269_v14 = vmul.f32 %v33_v9, %v33_v9  ;;  %v17_v18 = vld [vmem:[%s1263_s0 + $0x10] sm:$0xff]  ;;  %v35_v22 = vld [vmem:[%s1263_s0 + $0xa0] sm:$0xff] }
   0x4   :  { %816 = vmatprep.subr.msk.bf16.mxu0 %vm1018_vm1, %v814_v3  ;;  %v862_v16 = vpack.c.bf16 %v268_v7, %v267_v6  ;;  %v820_v17 = vpack.c.bf16 %v34_v13, %v33_v9  ;;  %v18_v19 = vld [vmem:[%s1263_s0 + $0x18] sm:$0xff]  ;;  %v270_v20 = vmul.f32 %v34_v13, %v34_v13  ;;  %v36_v23 = vld [vmem:[%s1263_s0 + $0xa8] sm:$0xff]  ;;  %v253_v25 = vmul.f32 %v17_v18, %v17_v18  ;;  %v19_v33 = vld [vmem:[%s1263_s0 + $0x20] sm:$0xff] }
   0x5   :  { %819 = vmatpush3.bf16.xpose.msk.msra.mxu0 %vm1018_vm1, %v817_v11  ;;  %v865_v21 = vpack.c.bf16 %v252_v12, %v251_v8  ;;  %v254_v26 = vmul.f32 %v18_v19, %v18_v19  ;;  %v271_v27 = vmul.f32 %v35_v22, %v35_v22  ;;  %v272_v28 = vmul.f32 %v36_v23, %v36_v23  ;;  %v20_v34 = vld [vmem:[%s1263_s0 + $0x28] sm:$0xff]  ;;  %v37_v36 = vld [vmem:[%s1263_s0 + $0xb0] sm:$0xff]  ;;  %v38_v37 = vld [vmem:[%s1263_s0 + $0xb8] sm:$0xff] }
   0x6   :  { %864 = vmatprep.subr.msk.bf16.mxu1 %vm1018_vm1, %v862_v16  ;;  %822 = vmatprep.subr.msk.bf16.mxu0 %vm1018_vm1, %v820_v17  ;;  %v868_v24 = vpack.c.bf16 %v270_v20, %v269_v14  ;;  %v823_v29 = vpack.c.bf16 %v18_v19, %v17_v18  ;;  %v826_v31 = vpack.c.bf16 %v36_v23, %v35_v22  ;;  %v1076_v38 = vld [vmem:[%s1264_s1] sm:$0xff] }
   0x7   :  { %867 = vmatpush3.bf16.xpose.msk.msra.mxu1 %vm1018_vm1, %v865_v21  ;;  %v871_v32 = vpack.c.bf16 %v254_v26, %v253_v25  ;;  %v874_v35 = vpack.c.bf16 %v272_v28, %v271_v27 }
   0x8   :  { %870 = vmatprep.subr.msk.bf16.mxu1 %vm1018_vm1, %v868_v24 }
   0xd   :  { %825 = vmatpush3.bf16.xpose.msk.msra.mxu0 %vm1018_vm1, %v823_v29 }
   0xe   :  { %828 = vmatprep.subr.msk.bf16.mxu0 %vm1018_vm1, %v826_v31 }
   0xf   :  { %8 = vsyncpa [#allocation3], 0  ;;  %873 = vmatpush3.bf16.xpose.msk.msra.mxu1 %vm1018_vm1, %v871_v32  ;;  %v255_v39 = vmul.f32 %v19_v33, %v19_v33  ;;  %v256_v40 = vmul.f32 %v20_v34, %v20_v34  ;;  %v1083_v41 = vld [vmem:[%s1265_s2] sm:$0xff]  ;;  %v273_v42 = vmul.f32 %v37_v36, %v37_v36  ;;  %v274_v43 = vmul.f32 %v38_v37, %v38_v37  ;;  %v1094_v47 = vld [vmem:[%s1265_s2 + $0x8] sm:$0xff] }
  0x10   :  { %876 = vmatprep.subr.msk.bf16.mxu1 %vm1018_vm1, %v874_v35  ;;  %v829_v44 = vpack.c.bf16 %v20_v34, %v19_v33  ;;  %772 = vmatprep.mubr.msk.f32.mxu0 %vm53_vm0, %v1076_v38  ;;  %v832_v45 = vpack.c.bf16 %v38_v37, %v37_v36  ;;  %v21_v48 = vld [vmem:[%s1263_s0 + $0x30] sm:$0xff]  ;;  %v22_v49 = vld [vmem:[%s1263_s0 + $0x38] sm:$0xff]  ;;  %v39_v51 = vld [vmem:[%s1263_s0 + $0xc0] sm:$0xff]  ;;  %v980_v59 = vmov 0   ;;  %v981_v5 = vmov 4  }
  0x11   :  { %508 = vperm.xlu1 %921, %v1083_v41   ;;  %471 = vperm.xlu0 %920, %v1083_v41   ;;  %v877_v46 = vpack.c.bf16 %v256_v40, %v255_v39  ;;  %v880_v50 = vpack.c.bf16 %v274_v43, %v273_v42  ;;  %v40_v52 = vld [vmem:[%s1263_s0 + $0xc8] sm:$0xff]  ;;  %v257_v53 = vmul.f32 %v21_v48, %v21_v48  ;;  %v23_v61 = vld [vmem:[%s1263_s0 + $0x40] sm:$0xff]  ;;  %v41_v0 = vld [vmem:[%s1263_s0 + $0xd0] sm:$0xff]  ;;  %v982_v15 = vmov 3  }
  0x12   :  { %v258_v54 = vmul.f32 %v22_v49, %v22_v49  ;;  %v275_v55 = vmul.f32 %v39_v51, %v39_v51  ;;  %v276_v56 = vmul.f32 %v40_v52, %v40_v52  ;;  %v835_v57 = vpack.c.bf16 %v22_v49, %v21_v48  ;;  %v24_v62 = vld [vmem:[%s1263_s0 + $0x48] sm:$0xff]  ;;  %v42_v1 = vld [vmem:[%s1263_s0 + $0xd8] sm:$0xff]  ;;  %v25_v12 = vld [vmem:[%s1263_s0 + $0x50] sm:$0xff] }
  0x13   :  { %v838_v58 = vpack.c.bf16 %v40_v52, %v39_v51  ;;  %v259_v2 = vmul.f32 %v23_v61, %v23_v61  ;;  %v260_v3 = vmul.f32 %v24_v62, %v24_v62  ;;  %v277_v6 = vmul.f32 %v41_v0, %v41_v0  ;;  %v26_v13 = vld [vmem:[%s1263_s0 + $0x58] sm:$0xff]  ;;  %v43_v16 = vld [vmem:[%s1263_s0 + $0xe0] sm:$0xff]  ;;  %v44_v17 = vld [vmem:[%s1263_s0 + $0xe8] sm:$0xff] }
  0x14   :  { %v883_v60 = vpack.c.bf16 %v258_v54, %v257_v53  ;;  %v886_v63 = vpack.c.bf16 %v276_v56, %v275_v55  ;;  %v278_v7 = vmul.f32 %v42_v1, %v42_v1  ;;  %v841_v8 = vpack.c.bf16 %v24_v62, %v23_v61  ;;  %v27_v26 = vld [vmem:[%s1263_s0 + $0x60] sm:$0xff]  ;;  %v28_v27 = vld [vmem:[%s1263_s0 + $0x68] sm:$0xff]  ;;  %v45_v29 = vld [vmem:[%s1263_s0 + $0xf0] sm:$0xff] }
  0x15   :  { %831 = vmatpush3.bf16.xpose.msk.msra.mxu0 %vm1018_vm1, %v829_v44  ;;  %512 = vperm.xlu1 %921, %v1094_v47   ;;  %v844_v9 = vpack.c.bf16 %v42_v1, %v41_v0  ;;  %v889_v11 = vpack.c.bf16 %v260_v3, %v259_v2  ;;  %v983_v18 = vmov 5   ;;  %v261_v19 = vmul.f32 %v25_v12, %v25_v12  ;;  %v46_v30 = vld [vmem:[%s1263_s0 + $0xf8] sm:$0xff]  ;;  %v29_v39 = vld [vmem:[%s1263_s0 + $0x70] sm:$0xff] }
  0x16   :  { %834 = vmatprep.subr.msk.bf16.mxu0 %vm1018_vm1, %v832_v45  ;;  %476 = vperm.xlu0 %920, %v1094_v47   ;;  %v892_v14 = vpack.c.bf16 %v278_v7, %v277_v6  ;;  %v262_v20 = vmul.f32 %v26_v13, %v26_v13  ;;  %v279_v21 = vmul.f32 %v43_v16, %v43_v16  ;;  %v30_v40 = vld [vmem:[%s1263_s0 + $0x78] sm:$0xff] }
  0x17   :  { %879 = vmatpush3.bf16.xpose.msk.msra.mxu1 %vm1018_vm1, %v877_v46  ;;  %v280_v22 = vmul.f32 %v44_v17, %v44_v17  ;;  %v847_v23 = vpack.c.bf16 %v26_v13, %v25_v12  ;;  %v850_v24 = vpack.c.bf16 %v44_v17, %v43_v16  ;;  %v263_v31 = vmul.f32 %v27_v26, %v27_v26  ;;  %v48_v46 = vld [vmem:[%s1264_s1 + $0x8] sm:$0xff]  ;;  %v50_v4 = vld [vmem:[%s1264_s1 + $0x18] sm:$0xff] }
  0x18   :  { %882 = vmatprep.subr.msk.bf16.mxu1 %vm1018_vm1, %v880_v50  ;;  %v895_v25 = vpack.c.bf16 %v262_v20, %v261_v19  ;;  %v264_v32 = vmul.f32 %v28_v27, %v28_v27  ;;  %v281_v33 = vmul.f32 %v45_v29, %v45_v29  ;;  %v282_v34 = vmul.f32 %v46_v30, %v46_v30 }
  0x19   :  { %923 = vset.pattern.permute.xlu1 %v980_v59  ;;  %v898_v28 = vpack.c.bf16 %v280_v22, %v279_v21  ;;  %v853_v35 = vpack.c.bf16 %v28_v27, %v27_v26  ;;  %v856_v36 = vpack.c.bf16 %v46_v30, %v45_v29  ;;  %v265_v42 = vmul.f32 %v29_v39, %v29_v39 }
  0x1a   :  { %500 = vperm.xlu1 %923, %v1094_v47   ;;  %922 = vset.pattern.permute.xlu0 %v980_v59  ;;  %v901_v37 = vpack.c.bf16 %v264_v32, %v263_v31  ;;  %v266_v43 = vmul.f32 %v30_v40, %v30_v40  ;;  %v859_v44 = vpack.c.bf16 %v30_v40, %v29_v39  ;;  %v457_v50 = vlaneseq }
  0x1b   :  { %496 = vperm.xlu0 %922, %v1083_v41  }
  0x1c   :  { %v907_v45 = vpack.c.bf16 %v266_v43, %v265_v42  ;;  %v458_v52 = vshrl.u32 %v457_v50, 7 }
  0x1d   :  { %837 = vmatpush3.bf16.xpose.msk.msra.mxu0 %vm1018_vm1, %v835_v57 }
  0x1e   :  { %840 = vmatprep.subr.msk.bf16.mxu0 %vm1018_vm1, %v838_v58  ;;  %924 = vset.pattern.permute.xlu1 %v981_v5  ;;  %v459_v54 = vsub.s32 0, %v458_v52 }
  0x1f   :  { %885 = vmatpush3.bf16.xpose.msk.msra.mxu1 %vm1018_vm1, %v883_v60  ;;  %528 = vperm.xlu1 %924, %v1083_v41  }
  0x20   :  { %888 = vmatprep.subr.msk.bf16.mxu1 %vm1018_vm1, %v886_v63  ;;  %925 = vset.pattern.permute.xlu0 %v981_v5 }
  0x21   :  { %532 = vperm.xlu0 %925, %v1094_v47  }
  0x23   :  { %926 = vset.pattern.permute.xlu1 %v982_v15 }
  0x24   :  { %548 = vperm.xlu1 %926, %v1083_v41  }
  0x25   :  { %843 = vmatpush3.bf16.xpose.msk.msra.mxu0 %vm1018_vm1, %v841_v8  ;;  %927 = vset.pattern.permute.xlu0 %v983_v18 }
  0x26   :  { %846 = vmatprep.subr.msk.bf16.mxu0 %vm1018_vm1, %v844_v9  ;;  %576 = vperm.xlu0 %927, %v1083_v41   ;;  %v904_v41 = vpack.c.bf16 %v282_v34, %v281_v33 }
  0x27   :  { %891 = vmatpush3.bf16.xpose.msk.msra.mxu1 %vm1018_vm1, %v889_v11 }
  0x28   :  { %894 = vmatprep.subr.msk.bf16.mxu1 %vm1018_vm1, %v892_v14  ;;  %552 = vperm.xlu1 %926, %v1094_v47  }
  0x2c   :  { %928 = vset.pattern.permute.xlu1 %v983_v18 }
  0x2d   :  { %849 = vmatpush3.bf16.xpose.msk.msra.mxu0 %vm1018_vm1, %v847_v23  ;;  %580 = vperm.xlu1 %928, %v1094_v47   ;;  %v49_v47 = vld [vmem:[%s1264_s1 + $0x10] sm:$0xff]  ;;  %s984_s1 = smov [#allocation2]  }
  0x2e   :  { %852 = vmatprep.subr.msk.bf16.mxu0 %vm1018_vm1, %v850_v24  ;;  %s660_s4 = sshll.u32 %s984_s1, 4  ;;  %s661_s4 = int_to_ptr.vmem [resolvable:$true] %s660_s4 }
  0x2f   :  { %897 = vmatpush3.bf16.xpose.msk.msra.mxu1 %vm1018_vm1, %v895_v25  ;;  %s953_s5 = scalar_lea.vmem %s661_s4, 512  ;;  %p958_p1 = scmp.lt.s32.totalorder %s661_s4, %s661_s4 }
  0x30   :  { %900 = vmatprep.subr.msk.bf16.mxu1 %vm1018_vm1, %v898_v28  ;;  %p954_p0 = scmp.ne.s32.totalorder %s661_s4, %s953_s5  ;;  %p959_p2 = scmp.lt.s32.totalorder %s953_s5, %s953_s5 }
  0x32   :  { %p960_p3 = por %p959_p2, %p958_p1 }
  0x34   :  { %p961_p4 = pnand %p960_p3, %p954_p0 }
  0x35   :  { %855 = vmatpush3.bf16.xpose.msk.msra.mxu0 %vm1018_vm1, %v853_v35 }
  0x36   :  { %858 = vmatprep.subr.msk.bf16.mxu0 %vm1018_vm1, %v856_v36 }
  0x37   :  { %903 = vmatpush3.bf16.xpose.msk.msra.mxu1 %vm1018_vm1, %v901_v37 }
  0x38   :  { %906 = vmatprep.subr.msk.bf16.mxu1 %vm1018_vm1, %v904_v41 }
  0x3d   :  { %861 = vmatpush3.bf16.xpose.msk.msra.mxu0 %vm1018_vm1, %v859_v44 }
  0x3f   :  { %909 = vmatpush3.bf16.xpose.msk.msra.mxu1 %vm1018_vm1, %v907_v45 }
  0x44   :  { %773 = vmatmul.mubr.msk.f32.vlgmr.msra.gmra.mrb[0].mxu0 %vm53_vm0, %v1076_v38 }
  0x45   :  { %774 = vmatprep.mubr.msk.f32.mxu0 %vm53_vm0, %v48_v46 }
  0x46   :  { %813 = vmatmul.mubr.msk.f32.vlgmr.msra.gmra.mrb[0].mxu1 %vm53_vm0, %v977_v10 }
  0x48   :  { %775 = vmatmul.mubr.msk.f32.gmra.mrb[2].mxu0 %vm53_vm0, %v48_v46 }
  0x49   :  { %776 = vmatprep.mubr.msk.f32.mxu0 %vm53_vm0, %v49_v47 }
  0x4c   :  { %777 = vmatmul.mubr.msk.f32.gmra.mrb[4].mxu0 %vm53_vm0, %v49_v47 }
  0x4d   :  { %778 = vmatprep.mubr.msk.f32.mxu0 %vm53_vm0, %v50_v4 }
  0x50   :  { %779 = vmatmul.mubr.msk.f32.gmra.mrb[6].mxu0 %vm53_vm0, %v50_v4 }
  0x90   :  { %v1223_v38 = vpop.permute.xlu1 %508  ;;  %v1227_v48 = vpop.permute.xlu0 %471 }
  0x94   :  { %v1225_v10 = vpop.permute.xlu1 %512 }
  0x95   :  { %v477_v51 = vpop.permute.xlu0 %476 }
  0x99   :  { %v501_v49 = vpop.permute.xlu1 %500 }
  0x9a   :  { %v497_v57 = vpop.permute.xlu0 %496 }
  0x9e   :  { %v1229_v53 = vpop.permute.xlu1 %528 }
  0xa0   :  { %v533_v19 = vpop.permute.xlu0 %532 }
  0xa3   :  { %v549_v62 = vpop.permute.xlu1 %548 }
  0xa7   :  { %v553_v29 = vpop.permute.xlu1 %552 }
 0x117   :  { %v1231_v55 = vpop.f32.mrb[0].mxu0 }
 0x118   :  { %v1233_v56 = vpop.f32.mrb[1].mxu0  ;;  %v453_v59 = vsub.f32 1.0, %v1231_v55  ;;  %v515_v63 = vmul.f32 %v1223_v38, %v1231_v55 }
 0x119   :  { %v448_v58 = vpop.f32.mrb[0].mxu1  ;;  %v454_v0 = vsub.f32 1.0, %v1233_v56  ;;  %v516_v1 = vmul.f32 %v1223_v38, %v1233_v56 }
 0x11a   :  { %v460_v60 = vrot.slane %v448_v58, %v459_v54  ;;  %v450_v61 = vpop.f32.mrb[1].mxu1  ;;  %v577_v58 = vpop.permute.xlu0 %576 }
 0x11b   :  { %v464_v2 = vrot.slane %v450_v61, %v459_v54  ;;  %v234_v3 = vpop.f32.mrb[2].mxu0 }
 0x11c   :  { %v465_v5 = vadd.f32 %v460_v60, %v453_v59  ;;  %v455_v6 = vsub.f32 1.0, %v234_v3  ;;  %v481_v7 = vmul.f32 %v477_v51, %v460_v60  ;;  %v517_v8 = vmul.f32 %v1225_v10, %v234_v3  ;;  %v236_v9 = vpop.f32.mrb[3].mxu0 }
 0x11d   :  { %v466_v11 = vadd.f32 %v464_v2, %v454_v0  ;;  %v456_v12 = vsub.f32 1.0, %v236_v9  ;;  %v482_v13 = vmul.f32 %v477_v51, %v464_v2  ;;  %v518_v14 = vmul.f32 %v1225_v10, %v236_v9 }
 0x11e   :  { %v491_v15 = vmul.f32 %v465_v5, %v465_v5  ;;  %v519_v16 = vmul.f32 %v515_v63, %v465_v5  ;;  %v555_v17 = vmul.f32 %v549_v62, %v465_v5  ;;  %v467_v18 = vadd.f32 %v460_v60, %v455_v6 }
 0x11f   :  { %v492_v20 = vmul.f32 %v466_v11, %v466_v11  ;;  %v520_v21 = vmul.f32 %v516_v1, %v466_v11  ;;  %v556_v22 = vmul.f32 %v549_v62, %v466_v11  ;;  %v485_v23 = vadd.f32 %v481_v7, %v455_v6  ;;  %v240_v24 = vpop.f32.mrb[4].mxu0 }
 0x120   :  { %v503_v25 = vmul.f32 %v497_v57, %v491_v15  ;;  %v493_v26 = vmul.f32 %v467_v18, %v467_v18  ;;  %v521_v27 = vmul.f32 %v517_v8, %v467_v18  ;;  %v468_v28 = vadd.f32 %v464_v2, %v456_v12  ;;  %v242_v30 = vpop.f32.mrb[5].mxu0 }
 0x121   :  { %v504_v31 = vmul.f32 %v497_v57, %v492_v20  ;;  %v489_v32 = vmax.f32 %v485_v23, 1e-15  ;;  %v486_v33 = vadd.f32 %v482_v13, %v456_v12  ;;  %v537_v34 = vmul.f32 %v533_v19, %v460_v60 }
 0x122   :  { %v494_v35 = vmul.f32 %v468_v28, %v468_v28  ;;  %v522_v36 = vmul.f32 %v518_v14, %v468_v28  ;;  %v505_v37 = vmul.f32 %v501_v49, %v493_v26  ;;  %v538_v39 = vmul.f32 %v533_v19, %v464_v2 }
 0x123   :  { %v565_v40 = vmul.f32 %v489_v32, %v489_v32  ;;  %v490_v41 = vmax.f32 %v486_v33, 1e-15  ;;  %v557_v42 = vmul.f32 %v553_v29, %v467_v18  ;;  %v558_v43 = vmul.f32 %v553_v29, %v468_v28  ;;  %v246_v44 = vpop.f32.mrb[6].mxu0 }
 0x124   :  { %v506_v45 = vmul.f32 %v501_v49, %v494_v35  ;;  %v525_v46 = vsub.f32 %v505_v37, %v521_v27  ;;  %v543_v47 = vmul.f32 %v1223_v38, %v240_v24  ;;  %v544_v4 = vmul.f32 %v1223_v38, %v242_v30  ;;  %v248_v50 = vpop.f32.mrb[7].mxu0 }
 0x125   :  { %v566_v51 = vmul.f32 %v490_v41, %v490_v41  ;;  %v479_v52 = vmul.f32 %v1227_v48, %v460_v60  ;;  %v480_v54 = vmul.f32 %v1227_v48, %v464_v2  ;;  %v523_v55 = vsub.f32 %v503_v25, %v519_v16 }
 0x126   :  { %v526_v56 = vsub.f32 %v506_v45, %v522_v36  ;;  %v541_v57 = vadd.f32 %v537_v34, %v525_v46  ;;  %v524_v61 = vsub.f32 %v504_v31, %v520_v21  ;;  %v535_v62 = vmul.f32 %v1229_v53, %v460_v60 }
 0x127   :  { %v483_v63 = vadd.f32 %v479_v52, %v453_v59  ;;  %v484_v49 = vadd.f32 %v480_v54, %v454_v0  ;;  %v536_v1 = vmul.f32 %v1229_v53, %v464_v2  ;;  %v559_v3 = vsub.f32 %v543_v47, %v555_v17  ;;  %v581_v53 = vpop.permute.xlu1 %580 }
 0x128   :  { %v542_v5 = vadd.f32 %v538_v39, %v526_v56  ;;  %v569_v38 = vsub.f32 %v565_v40, %v541_v57  ;;  %v539_v6 = vadd.f32 %v535_v62, %v523_v55  ;;  %v560_v7 = vsub.f32 %v544_v4, %v556_v22 }
 0x129   :  { %v487_v8 = vmax.f32 %v483_v63, 1e-15  ;;  %v488_v9 = vmax.f32 %v484_v49, 1e-15  ;;  %v540_v11 = vadd.f32 %v536_v1, %v524_v61  ;;  %v583_v48 = vmul.f32 %v577_v58, %v559_v3 }
 0x12a   :  { %v570_v12 = vsub.f32 %v566_v51, %v542_v5  ;;  %v573_v13 = vmax.f32 %v569_v38, 1e-15  ;;  %v584_v14 = vmul.f32 %v577_v58, %v560_v7  ;;  %v545_v15 = vmul.f32 %v1225_v10, %v246_v44 }
 0x12b   :  { %v563_v16 = vmul.f32 %v487_v8, %v487_v8  ;;  %v564_v60 = vmul.f32 %v488_v9, %v488_v9  ;;  %v587_v59 = vmul.f32 %v583_v48, %v487_v8  ;;  %v546_v0 = vmul.f32 %v1225_v10, %v248_v50 }
 0x12c   :  { %v574_v2 = vmax.f32 %v570_v12, 1e-15  ;;  %929 = vrcp.f32 %v573_v13  ;;  %v588_v17 = vmul.f32 %v584_v14, %v488_v9  ;;  %v561_v18 = vsub.f32 %v545_v15, %v557_v42 }
 0x12d   :  { %v567_v19 = vsub.f32 %v563_v16, %v539_v6  ;;  %v568_v20 = vsub.f32 %v564_v60, %v540_v11  ;;  %v562_v21 = vsub.f32 %v546_v0, %v558_v43 }
 0x12e   :  { %931 = vrcp.f32 %v574_v2  ;;  %v585_v22 = vmul.f32 %v581_v53, %v561_v18 }
 0x12f   :  { %v571_v23 = vmax.f32 %v567_v19, 1e-15  ;;  %v572_v24 = vmax.f32 %v568_v20, 1e-15  ;;  %v586_v25 = vmul.f32 %v581_v53, %v562_v21 }
 0x130   :  { %v589_v26 = vmul.f32 %v585_v22, %v489_v32 }
 0x131   :  { %933 = vrcp.f32 %v571_v23  ;;  %v590_v27 = vmul.f32 %v586_v25, %v490_v41 }
 0x132   :  { %935 = vrcp.f32 %v572_v24 }
 0x136   :  { %v930_v28 = vpop.eup %929 }
 0x137   :  { %v597_v29 = vmul.f32 %v930_v28, %v589_v26 }
 0x138   :  { %v932_v10 = vpop.eup %931 }
 0x139   :  { %v598_v30 = vmul.f32 %v932_v10, %v590_v27  ;;  %v601_v31 = vmul.f32 %v597_v29, %v597_v29 }
 0x13b   :  { %v934_v33 = vpop.eup %933  ;;  %v602_v34 = vmul.f32 %v598_v30, %v598_v30  ;;  %v605_v35 = vadd.f32 1.0, %v601_v31 }
 0x13c   :  { %v936_v36 = vpop.eup %935  ;;  %v595_v37 = vmul.f32 %v934_v33, %v587_v59 }
 0x13d   :  { %v596_v39 = vmul.f32 %v936_v36, %v588_v17  ;;  %v606_v40 = vadd.f32 1.0, %v602_v34  ;;  %937 = vrsqrt.f32 %v605_v35  ;;  %vm623_vm2 = vcmp.eq.f32.partialorder %v605_v35, inf }
 0x13e   :  { %v599_v42 = vmul.f32 %v595_v37, %v595_v37  ;;  %v626_v47 = vand.u32 2147483648, %v605_v35  ;;  %vm625_vm3 = vcmp.eq.f32.partialorder %v605_v35, 0.0 }
 0x13f   :  { %v600_v43 = vmul.f32 %v596_v39, %v596_v39  ;;  %939 = vrsqrt.f32 %v606_v40  ;;  %vm630_vm4 = vcmp.eq.f32.partialorder %v606_v40, inf  ;;  %v633_v52 = vand.u32 2147483648, %v606_v40 }
 0x140   :  { %v603_v32 = vadd.f32 1.0, %v599_v42  ;;  %vm632_vm5 = vcmp.eq.f32.partialorder %v606_v40, 0.0 }
 0x141   :  { %v604_v44 = vadd.f32 1.0, %v600_v43 }
 0x142   :  { %941 = vrsqrt.f32 %v603_v32  ;;  %vm609_vm6 = vcmp.eq.f32.partialorder %v603_v32, inf  ;;  %vm611_vm7 = vcmp.eq.f32.partialorder %v603_v32, 0.0  ;;  %v612_v62 = vand.u32 2147483648, %v603_v32 }
 0x143   :  { %943 = vrsqrt.f32 %v604_v44  ;;  %vm616_vm8 = vcmp.eq.f32.partialorder %v604_v44, inf  ;;  %vm618_vm9 = vcmp.eq.f32.partialorder %v604_v44, 0.0  ;;  %v619_v5 = vand.u32 2147483648, %v604_v44 }
 0x147   :  { %v938_v41 = vpop.eup %937 }
 0x148   :  { %v622_v45 = vmul.f32 %v938_v41, %v605_v35 }
 0x149   :  { %v940_v46 = vpop.eup %939 }
 0x14a   :  { %v624_v4 = vsel %vm623_vm2, %v605_v35, %v622_v45  ;;  %v629_v50 = vmul.f32 %v940_v46, %v606_v40 }
 0x14b   :  { %v627_v51 = vsel %vm625_vm3, %v626_v47, %v624_v4 }
 0x14c   :  { %v942_v54 = vpop.eup %941  ;;  %v631_v55 = vsel %vm630_vm4, %v606_v40, %v629_v50  ;;  %v637_v56 = vadd.f32 %v627_v51, %v597_v29 }
 0x14d   :  { %v944_v57 = vpop.eup %943  ;;  %v608_v58 = vmul.f32 %v942_v54, %v603_v32  ;;  %v634_v61 = vsel %vm632_vm5, %v633_v52, %v631_v55 }
 0x14e   :  { %v615_v63 = vmul.f32 %v944_v57, %v604_v44  ;;  %v638_v49 = vadd.f32 %v634_v61, %v598_v30  ;;  %v641_v1 = vmax.f32 %v637_v56, 1e-15 }
 0x14f   :  { %v610_v3 = vsel %vm609_vm6, %v603_v32, %v608_v58 }
 0x150   :  { %v613_v38 = vsel %vm611_vm7, %v612_v62, %v610_v3  ;;  %v617_v6 = vsel %vm616_vm8, %v604_v44, %v615_v63  ;;  %v642_v7 = vmax.f32 %v638_v49, 1e-15  ;;  %945 = vlog2.f32 %v641_v1 }
 0x151   :  { %v620_v8 = vsel %vm618_vm9, %v619_v5, %v617_v6  ;;  %v635_v9 = vadd.f32 %v613_v38, %v595_v37 }
 0x152   :  { %v636_v11 = vadd.f32 %v620_v8, %v596_v39  ;;  %947 = vlog2.f32 %v642_v7 }
 0x153   :  { %v639_v48 = vmax.f32 %v635_v9, 1e-15 }
 0x154   :  { %v640_v12 = vmax.f32 %v636_v11, 1e-15 }
 0x155   :  { %949 = vlog2.f32 %v639_v48 }
 0x156   :  { %951 = vlog2.f32 %v640_v12 }
 0x15a   :  { %v946_v13 = vpop.eup %945 }
 0x15b   :  { %v648_v14 = vmul.f32 0.6931472, %v946_v13 }
 0x15c   :  { %v948_v15 = vpop.eup %947 }
 0x15d   :  { %v650_v16 = vmul.f32 0.6931472, %v948_v15  ;;  %653 = vst [vmem:[#allocation2 + $0x10] sm:$0xff] %v648_v14 }
 0x15f   :  { %v950_v60 = vpop.eup %949  ;;  %654 = vst [vmem:[#allocation2 + $0x18] sm:$0xff] %v650_v16 }
 0x160   :  { %v952_v59 = vpop.eup %951  ;;  %v644_v0 = vmul.f32 0.6931472, %v950_v60 }
 0x161   :  { %v646_v53 = vmul.f32 0.6931472, %v952_v59 }
 0x162   :  { %651 = vst [vmem:[#allocation2] sm:$0xff] %v644_v0 }
 0x163   :  { %652 = vst [vmem:[#allocation2 + $0x8] sm:$0xff] %v646_v53 }
 0x164   :  { %964 = shalt.err (!%p961_p4)
}
 0x165   :  { %s965_s8 = scalar_lea.hbm %s1266_s3, 512 }
 0x166   :  { %p966_p5 = scmp.ne.s32.totalorder %s1266_s3, %s965_s8  ;;  %p969_p6 = scmp.lt.u32.totalorder %s965_s8, %s1266_s3 }
 0x168   :  { %p971_p7 = pnand %p969_p6, %p966_p5 }
 0x16a   :  { %974 = shalt.err (!%p971_p7)
}
 0x16b   :  { %s985_s13 = smov 256   ;;  %s986_s14 = smov 16  }
 0x16c   :  { %666 = dma.vmem_to_hbm [thread:$0]  %s661_s4, 512, %s1266_s3, [#allocation3], %s985_s13, %s985_s13, %s986_s14  }
 0x16d   :  { %975 = dma.done.wait [#allocation3], 512  }
 0x16e   :  { %976 = vsyncadd [#allocation3], 4294966784 }
 0x16f   :  { %670 = vsyncpa [#allocation3], 1 }

</bundles_post_ra>
